<compile_context>
chip_gen: v7x
topology: tpu7x:2x2x1
jax: 0.10.0
libtpu: 0.0.40
codegen_flags: <defaults>
</compile_context>

<pallas_src>
import functools

import jax
import jax.numpy as jnp
import numpy as np
from jax.experimental import pallas as pl
from jax.experimental.pallas import tpu as pltpu

EPSILON_F = 1e-12


def _round_up(x, mult):
    return ((x + mult - 1) // mult) * mult


def _vmem_capacity_bytes():
    # Per-core VMEM capacity; fall back to the smallest production figure (v7x: 64 MiB).
    try:
        return int(pltpu.get_tpu_info().vmem_capacity_bytes)
    except Exception:
        return 64 << 20


def _vmem_limit(need_bytes, cap_bytes):
    lim = int(need_bytes * 1.3) + (4 << 20)
    lim = max(lim, 32 << 20)                 # never below the usual scoped default
    return int(min(lim, 0.9 * cap_bytes))


def compute_feature_spectrum(F_param):
    """gF = F^T F / (||F^T F||_F + eps);  eigendecomposition of gF."""
    FF = F_param.T @ F_param
    gF = FF / (jnp.linalg.norm(FF) + EPSILON_F)
    # TODO(synk): symmetric eigendecomposition has no Pallas equivalent; stays in XLA.
    Lambda_F, Q_F = jnp.linalg.eigh(gF)
    return Lambda_F.astype(jnp.float32), Q_F.astype(jnp.float32)


# ----------------------------------------------------------------------------
# Call 1:  W = G * (T1 @ Q_S)       T1 = Q_F^T X (precomputed in XLA)
#          grid (j, k):  j = output column tile of W, k = contraction tile
# ----------------------------------------------------------------------------
def _w_kernel(lf_ref, gls_ref, t1_ref, qs_ref, w_ref, acc_ref, *, t, resident):
    k = pl.program_id(1)
    nk = pl.num_programs(1)

    @pl.when(k == 0)
    def _init():
        acc_ref[...] = jnp.zeros_like(acc_ref)

    if resident:                                     # T1 pinned in VMEM: slice k-tile
        t1_blk = t1_ref[:, pl.ds(pl.multiple_of(k * t, 128), t)]
    else:                                            # T1 streamed as (m, t) tiles
        t1_blk = t1_ref[...]

    # acc += T1[:, k-tile] @ Q_S[k-tile, j-tile]     (MXU, f32 accumulation)
    acc_ref[...] += jnp.dot(t1_blk, qs_ref[...], preferred_element_type=jnp.float32)

    @pl.when(k == nk - 1)
    def _finalize():
        # G = 1 / (1 - gamma * Lambda_F Lambda_S^T);  gamma folded into gls.
        denom = 1.0 - lf_ref[...] * gls_ref[...]                     # (m, t) f32
        w_ref[...] = (acc_ref[...] * pl.reciprocal(denom, approx=True)
                      ).astype(w_ref.dtype)


# ----------------------------------------------------------------------------
# Call 2:  Z^T[j-tile, :] = (sum_k Q_S[j-tile, k-tile] @ W^T[k-tile, :]) @ Q_F^T
# ----------------------------------------------------------------------------
def _zt_kernel(qft_ref, wt_ref, qs_ref, zt_ref, acc_ref, *, t, resident):
    k = pl.program_id(1)
    nk = pl.num_programs(1)

    @pl.when(k == 0)
    def _init():
        acc_ref[...] = jnp.zeros_like(acc_ref)

    if resident:                                     # W^T pinned in VMEM
        wt_blk = wt_ref[pl.ds(pl.multiple_of(k * t, 128), t), :]
    else:
        wt_blk = wt_ref[...]

    # acc += Q_S[j-tile, k-tile] @ W^T[k-tile, :]    ((t,t)@(t,m), no transposes)
    acc_ref[...] += jnp.dot(qs_ref[...], wt_blk, preferred_element_type=jnp.float32)

    @pl.when(k == nk - 1)
    def _finalize():
        # Tiny (t,m)@(m,m) matmul; kept entirely in f32 (no bf16 round-trip of acc).
        zt_ref[...] = jnp.dot(acc_ref[...], qft_ref[...],
                              preferred_element_type=jnp.float32).astype(zt_ref.dtype)


def idm_sgc_forward(X, F_param, Q_S, Lambda_S, gamma, *,
                    tile=1024, out_dtype=jnp.float32, compute_dtype=jnp.bfloat16):
    """EIGNN IDM_SGC forward.  X: (m, n) = features x nodes.  Returns Z: (m, n)."""
    m, n = X.shape
    assert Q_S.shape == (n, n)

    # ---- tile selection: largest 128-aligned tile <= `tile` dividing the padded n ----
    n128 = _round_up(n, 128)
    t_hi = max(128, min((int(tile) // 128) * 128, n128))
    t = 128
    for cand in range(t_hi, 127, -128):
        if n128 % cand == 0:
            t = cand
            break
    if t < 512 <= t_hi:            # accept some padding rather than tiny tiles
        t = 512
    n_pad = _round_up(n, t)
    nj = nk = n_pad // t
    pad = n_pad - n

    # ---- XLA-side spectral precompute (no Pallas eig) ----
    Lambda_F, Q_F = compute_feature_spectrum(F_param)                # (m,), (m, m) f32

    X32 = X.astype(jnp.float32)
    Qs32 = Q_S.astype(jnp.float32)
    Ls = jnp.asarray(Lambda_S, jnp.float32).reshape(-1)
    if pad:
        X32 = jnp.pad(X32, ((0, 0), (0, pad)))
        Qs32 = jnp.pad(Qs32, ((0, pad), (0, pad)))
        Ls = jnp.pad(Ls, (0, pad))        # pad with 0 -> filter denominator stays 1

    # T1 = Q_F^T X computed once in f32 (removes in-kernel LHS transpose / prologue).
    T1 = jnp.dot(Q_F.T, X32).astype(compute_dtype)                   # (m, n_pad)
    Qs_c = Qs32.astype(compute_dtype)                                # (n_pad, n_pad)
    QfT = Q_F.T                                                      # (m, m) f32
    lf = Lambda_F.reshape(m, 1)                                      # (m, 1) f32
    gls = (jnp.asarray(gamma, jnp.float32) * Ls).reshape(1, n_pad)   # (1, n_pad) f32

    # ---- VMEM budgeting / residency decision (with (8,128) layout padding) ----
    c_isz = np.dtype(compute_dtype).itemsize
    out_isz = np.dtype(out_dtype).itemsize
    cap = _vmem_capacity_bytes()

    def _blk(shape, isz):
        return _round_up(shape[-2], 8) * _round_up(shape[-1], 128) * isz

    qs_blk = _blk((t, t), c_isz)
    need1_common = (2 * (_blk((m, 1), 4) + _blk((1, t), 4) + qs_blk
                         + _blk((m, t), c_isz)) + _blk((m, t), 4))
    need2_common = (2 * (_blk((m, m), 4) + qs_blk + _blk((t, m), out_isz))
                    + _blk((t, m), 4))
    res_mid1 = 2 * _blk((m, n_pad), c_isz)
    res_mid2 = 2 * _blk((n_pad, m), c_isz)
    til_mid1 = 2 * _blk((m, t), c_isz)
    til_mid2 = 2 * _blk((t, m), c_isz)

    resident = max(need1_common + res_mid1, need2_common + res_mid2) <= int(0.70 * cap)
    vmem1 = _vmem_limit(need1_common + (res_mid1 if resident else til_mid1), cap)
    vmem2 = _vmem_limit(need2_common + (res_mid2 if resident else til_mid2), cap)

    if resident:
        t1_spec = pl.BlockSpec((m, n_pad), lambda j, k: (0, 0))      # pinned in VMEM
        wt_spec = pl.BlockSpec((n_pad, m), lambda j, k: (0, 0))
    else:
        t1_spec = pl.BlockSpec((m, t), lambda j, k: (0, k))          # streamed per k
        wt_spec = pl.BlockSpec((t, m), lambda j, k: (k, 0))

    grid = (nj, nk)
    sem = ("parallel", "arbitrary")   # j: independent output tiles; k: reduction

    # ---- call 1:  W = G * (T1 @ Q_S) ----
    W = pl.pallas_call(
        functools.partial(_w_kernel, t=t, resident=resident),
        out_shape=jax.ShapeDtypeStruct((m, n_pad), compute_dtype),
        grid=grid,
        in_specs=[
            pl.BlockSpec((m, 1), lambda j, k: (0, 0)),        # Lambda_F column
            pl.BlockSpec((1, t), lambda j, k: (0, j)),        # gamma * Lambda_S row tile
            t1_spec,                                          # T1
            pl.BlockSpec((t, t), lambda j, k: (k, j)),        # Q_S tile
        ],
        out_specs=pl.BlockSpec((m, t), lambda j, k: (0, j)),  # lane-dense output
        scratch_shapes=[pltpu.VMEM((m, t), jnp.float32)],
        compiler_params=pltpu.CompilerParams(
            dimension_semantics=sem, vmem_limit_bytes=vmem1),
    )(lf, gls, T1, Qs_c)

    # One XLA transpose of W (O(m*n) bytes) so call 2 needs no in-kernel transpose.
    WT = W.T                                                   # (n_pad, m)

    # ---- call 2:  Z^T = (W @ Q_S^T)^T @ Q_F^T ----
    ZT = pl.pallas_call(
        functools.partial(_zt_kernel, t=t, resident=resident),
        out_shape=jax.ShapeDtypeStruct((n_pad, m), out_dtype),
        grid=grid,
        in_specs=[
            pl.BlockSpec((m, m), lambda j, k: (0, 0)),        # Q_F^T (f32)
            wt_spec,                                          # W^T
            pl.BlockSpec((t, t), lambda j, k: (j, k)),        # Q_S tile
        ],
        out_specs=pl.BlockSpec((t, m), lambda j, k: (j, 0)),
        scratch_shapes=[pltpu.VMEM((t, m), jnp.float32)],
        compiler_params=pltpu.CompilerParams(
            dimension_semantics=sem, vmem_limit_bytes=vmem2),
    )(QfT, WT, Qs_c)

    return ZT[:n, :].T                                         # (m, n)


if __name__ == "__main__":
    # Small demo: feature dim m=32, n=448 nodes.  tile=256 so the demo exercises a real
    # (2, 2) grid plus zero-padding (n padded 448 -> 512); production default is tile=1024.
    m, n = 32, 448
    tile = 256
    gamma = 0.8

    key = jax.random.PRNGKey(0)
    k1, k2, k3 = jax.random.split(key, 3)

    # Parameter F: (m, m), xavier-uniform (deterministic, in-script).
    bound = float(np.sqrt(6.0 / (m + m)))
    F_param = jax.random.uniform(k1, (m, m), jnp.float32, -bound, bound)

    # Synthetic symmetric normalized adjacency + its eigendecomposition
    # (what IDM_SGC.__init__ precomputes from sp_adj with scipy).
    A = (jax.random.uniform(k2, (n, n)) > 0.9).astype(jnp.float32)
    A = jnp.maximum(A, A.T)
    A = A + jnp.eye(n, dtype=jnp.float32)              # self loops
    d_inv_sqrt = 1.0 / jnp.sqrt(jnp.sum(A, axis=1))
    S_norm = A * d_inv_sqrt[:, None] * d_inv_sqrt[None, :]
    Lam_np, Q_np = np.linalg.eigh(np.asarray(S_norm, dtype=np.float64))
    Lambda_S = jnp.asarray(Lam_np, dtype=jnp.float32)  # (n,)
    Q_S = jnp.asarray(Q_np, dtype=jnp.float32)         # (n, n)

    # Input features X: (m, n)
    X = jax.random.normal(k3, (m, n), jnp.float32)

    Z = jax.block_until_ready(
        idm_sgc_forward(X, F_param, Q_S, Lambda_S, gamma, tile=tile))

    # Pure-JAX f32 reference on the unpadded problem.
    Lf, Qf = compute_feature_spectrum(F_param)
    G = 1.0 / (1.0 - gamma * Lf.reshape(-1, 1) * Lambda_S.reshape(1, -1))
    Z_ref = Qf @ (G * (Qf.T @ X @ Q_S)) @ Q_S.T

    Zn, Zr = np.asarray(Z), np.asarray(Z_ref)
    assert Zn.shape == (m, n)
    err = float(np.max(np.abs(Zn - Zr)))
    # Tolerance sized for bf16 matmul operands with f32 accumulation
    # (+ approx reciprocal, ~2^-12 rel err).
    assert np.allclose(Zn, Zr, rtol=5e-2, atol=1e-1), f"max abs err {err}"
    print("KERNEL_OK")
</pallas_src>

<mosaic_0001>
module attributes {stable_mosaic.version = 11 : i64} {
  func.func @_w_kernel(%arg0: i32, %arg1: i32, %arg2: memref<32x1xf32, #tpu.memory_space<vmem>>, %arg3: memref<1x256xf32, #tpu.memory_space<vmem>>, %arg4: memref<32x512xbf16, #tpu.memory_space<vmem>>, %arg5: memref<256x256xbf16, #tpu.memory_space<vmem>>, %arg6: memref<32x256xbf16, #tpu.memory_space<vmem>>, %arg7: memref<32x256xf32, #tpu.memory_space<vmem>>) attributes {dimension_semantics = [#tpu.dimension_semantics<parallel>, #tpu.dimension_semantics<arbitrary>], iteration_bounds = array<i64: 2, 2>, scalar_prefetch = 0 : i64, scratch_operands = 1 : i64, tpu.core_type = #tpu.core_type<tc>, window_params = [{pipeline_mode = #tpu.pipeline_mode<synchronous>, transform_indices = @transform_0, window_bounds = array<i64: 32, 1>}, {transform_indices = @transform_1, window_bounds = array<i64: 1, 256>}, {pipeline_mode = #tpu.pipeline_mode<synchronous>, transform_indices = @transform_2, window_bounds = array<i64: 32, 512>}, {transform_indices = @transform_3, window_bounds = array<i64: 256, 256>}, {transform_indices = @transform_4, window_bounds = array<i64: 32, 256>}]} {
    %c0_i32 = arith.constant 0 : i32
    %0 = arith.cmpi eq, %arg1, %c0_i32 : i32
    %1 = arith.extui %0 : i1 to i32
    %c0_i32_0 = arith.constant 0 : i32
    %2 = arith.cmpi ne, %1, %c0_i32_0 : i32
    scf.if %2 {
      %cst_8 = arith.constant 0.000000e+00 : f32
      %15 = vector.broadcast %cst_8 : f32 to vector<32x256xf32>
      %c0_9 = arith.constant 0 : index
      %c0_10 = arith.constant 0 : index
      %16 = vector.load %arg7[%c0_9, %c0_10] : memref<32x256xf32, #tpu.memory_space<vmem>>, vector<32x256xf32>
      tpu.vector_store %arg7[%c0_9, %c0_10], %15 {strides = array<i32>} : memref<32x256xf32, #tpu.memory_space<vmem>>, vector<32x256xf32>,
    } else {
    }
    %c256_i32 = arith.constant 256 : i32
    %3 = arith.muli %arg1, %c256_i32 : i32
    %4 = tpu.assume_multiple %3, 128 : i32
    %c0 = arith.constant 0 : index
    %5 = arith.index_cast %4 : i32 to index
    %6 = vector.load %arg4[%c0, %5] : memref<32x512xbf16, #tpu.memory_space<vmem>>, vector<32x256xbf16>
    %c0_1 = arith.constant 0 : index
    %c0_2 = arith.constant 0 : index
    %7 = vector.load %arg7[%c0_1, %c0_2] : memref<32x256xf32, #tpu.memory_space<vmem>>, vector<32x256xf32>
    %c0_3 = arith.constant 0 : index
    %c0_4 = arith.constant 0 : index
    %8 = vector.load %arg5[%c0_3, %c0_4] : memref<256x256xbf16, #tpu.memory_space<vmem>>, vector<256x256xbf16>
    %cst = arith.constant dense<0.000000e+00> : vector<32x256xf32>
    %9 = tpu.matmul %6, %8, %cst {dimension_numbers = #tpu.dot_dimension_numbers<[1], [0], [0], [1], [0, 0, 1, 1], [], []>} : vector<32x256xbf16>, vector<256x256xbf16>, vector<32x256xf32> -> vector<32x256xf32>
    %10 = arith.addf %7, %9 : vector<32x256xf32>
    %c0_5 = arith.constant 0 : index
    %c0_6 = arith.constant 0 : index
    %11 = vector.load %arg7[%c0_5, %c0_6] : memref<32x256xf32, #tpu.memory_space<vmem>>, vector<32x256xf32>
    tpu.vector_store %arg7[%c0_5, %c0_6], %10 {strides = array<i32>} : memref<32x256xf32, #tpu.memory_space<vmem>>, vector<32x256xf32>,
    %c1_i32 = arith.constant 1 : i32
    %12 = arith.cmpi eq, %arg1, %c1_i32 : i32
    %13 = arith.extui %12 : i1 to i32
    %c0_i32_7 = arith.constant 0 : i32
    %14 = arith.cmpi ne, %13, %c0_i32_7 : i32
    scf.if %14 {
      %c0_8 = arith.constant 0 : index
      %c0_9 = arith.constant 0 : index
      %15 = vector.load %arg2[%c0_8, %c0_9] : memref<32x1xf32, #tpu.memory_space<vmem>>, vector<32x1xf32>
      %c0_10 = arith.constant 0 : index
      %c0_11 = arith.constant 0 : index
      %16 = vector.load %arg3[%c0_10, %c0_11] : memref<1x256xf32, #tpu.memory_space<vmem>>, vector<1x256xf32>
      %17 = vector.broadcast %15 : vector<32x1xf32> to vector<32x256xf32>
      %18 = vector.broadcast %16 : vector<1x256xf32> to vector<32x256xf32>
      %19 = arith.mulf %17, %18 : vector<32x256xf32>
      %cst_12 = arith.constant 1.000000e+00 : f32
      %20 = vector.broadcast %cst_12 : f32 to vector<32x256xf32>
      %21 = arith.subf %20, %19 : vector<32x256xf32>
      %c0_13 = arith.constant 0 : index
      %c0_14 = arith.constant 0 : index
      %22 = vector.load %arg7[%c0_13, %c0_14] : memref<32x256xf32, #tpu.memory_space<vmem>>, vector<32x256xf32>
      %23 = tpu.reciprocal %21 {approx = true} : vector<32x256xf32> -> vector<32x256xf32>
      %24 = arith.mulf %22, %23 : vector<32x256xf32>
      %25 = arith.truncf %24 : vector<32x256xf32> to vector<32x256xbf16>
      %c0_15 = arith.constant 0 : index
      %c0_16 = arith.constant 0 : index
      %26 = vector.load %arg6[%c0_15, %c0_16] : memref<32x256xbf16, #tpu.memory_space<vmem>>, vector<32x256xbf16>
      tpu.vector_store %arg6[%c0_15, %c0_16], %25 {strides = array<i32>} : memref<32x256xbf16, #tpu.memory_space<vmem>>, vector<32x256xbf16>,
    } else {
    }
    return
  }
  func.func @transform_0(%arg0: i32, %arg1: i32) -> (i32, i32) {
    %c0_i32 = arith.constant 0 : i32
    %c0_i32_0 = arith.constant 0 : i32
    %c0_i32_1 = arith.constant 0 : i32
    return %c0_i32, %c0_i32_0 : i32, i32
  }
  func.func @transform_1(%arg0: i32, %arg1: i32) -> (i32, i32) {
    %c0_i32 = arith.constant 0 : i32
    %c0_i32_0 = arith.constant 0 : i32
    return %c0_i32, %arg0 : i32, i32
  }
  func.func @transform_2(%arg0: i32, %arg1: i32) -> (i32, i32) {
    %c0_i32 = arith.constant 0 : i32
    %c0_i32_0 = arith.constant 0 : i32
    %c0_i32_1 = arith.constant 0 : i32
    return %c0_i32, %c0_i32_0 : i32, i32
  }
  func.func @transform_3(%arg0: i32, %arg1: i32) -> (i32, i32) {
    %c0_i32 = arith.constant 0 : i32
    return %arg1, %arg0 : i32, i32
  }
  func.func @transform_4(%arg0: i32, %arg1: i32) -> (i32, i32) {
    %c0_i32 = arith.constant 0 : i32
    %c0_i32_0 = arith.constant 0 : i32
    return %c0_i32, %arg0 : i32, i32
  }
}

</mosaic_0001>

<bundles_post_ra>
// kernel: tpu_custom_call.1
= control target key start
LH: loop header
LB: loop body
LE: loop exit
PB: predicated region body
PF: predicated region fallthrough
CT: control target
= control target key end

     0   :  { %s1676_s0 = inlined_call_operand.vmem [shape: f32[32,1], index: 0, kind: input, shape index: {}]   ;;  %s1677_s1 = inlined_call_operand.vmem [shape: f32[1,512], index: 1, kind: input, shape index: {}]   ;;  %s1678_s2 = inlined_call_operand.hbm [shape: bf16[32,512], index: 2, kind: input, shape index: {}]   ;;  %s1679_s3 = inlined_call_operand.hbm [shape: bf16[512,512], index: 3, kind: input, shape index: {}]   ;;  %s1680_s4 = inlined_call_operand.hbm [shape: bf16[32,512], index: 4, kind: output, shape index: {}]  }
   0x1   :  { %1695 = sst [smem:[#allocation17_spill]] %s1678_s2 }
   0x2   :  { %1696 = sst [smem:[#allocation18_spill]] %s1680_s4 }
   0x3   :  { %9 = vsyncpa [#allocation4], 0 }
   0x4   :  { %10 = vsyncpa [#allocation7], 0 }
   0x5   :  { %12 = vsyncpa [#allocation7 + $0x1], 0 }
   0x6   :  { %13 = vsyncpa [#allocation5], 0 }
   0x7   :  { %15 = vsyncpa [#allocation5 + $0x1], 0  ;;  %s1331_s15 = smov 0   ;;  %s1333_s16 = smov 0  }
   0x8   :  { %s1335_s17 = smov 0   ;;  %s1337_s18 = smov 0  }
   0x9   :  { %s1339_s19 = smov 0   ;;  %s1341_s20 = smov 0  }
   0xa   :  { %s1343_s21 = smov 0   ;;  %s1345_s22 = smov 0  }
   0xb   :  { %s1347_s23 = smov 0   ;;  %s1349_s24 = smov 0  }
   0xc   :  { %s1351_s25 = smov 0  }
   0xd LB: > { %1697 = sst [smem:[#allocation12_spill]] %s1252_s15  ;;  %s812_s26 = sadd.s32 4294967295, %s1292_s25   ;;  %s1292_s25 = sphi %s1351_s25, %s21_s25   ;;  %s1288_s24 = sphi %s1349_s24, %s1735_s24   ;;  %s1284_s23 = sphi %s1347_s23, %s1734_s23   ;;  %s1280_s22 = sphi %s1345_s22, %s1733_s22   ;;  %s1276_s21 = sphi %s1343_s21, %s1732_s21   ;;  %s1272_s20 = sphi %s1341_s20, %s1731_s20   ;;  %s1268_s19 = sphi %s1339_s19, %s1730_s19   ;;  %s1264_s18 = sphi %s1337_s18, %s1729_s18   ;;  %s1260_s17 = sphi %s1335_s17, %s1728_s17   ;;  %s1256_s16 = sphi %s1333_s16, %s1727_s16   ;;  %s1252_s15 = sphi %s1331_s15, %s1726_s15  }
   0xe   : > { %1698 = sst [smem:[#allocation13_spill]] %s1292_s25  ;;  %s813_s27 = sadd.s32 4294967294, %s1292_s25  }
   0xf   : > { %p117_p0 = scmp.ne.s32.totalorder %s1272_s20, %s1268_s19  ;;  %p118_p1 = scmp.eq.s32.totalorder %s1292_s25, 0 }
  0x10   : > { %p123_p2 = scmp.ne.s32.totalorder %s1268_s19, %s1264_s18  ;;  %p1391_p3 = scmp.eq.s32.totalorder %s812_s26, 0 }
  0x11   : > { %p1396_p4 = por %p118_p1, %p117_p0  ;;  %p146_p5 = scmp.ne.s32.totalorder %s1260_s17, %s1256_s16 }
  0x12   : > { %s1699_s29 = scalar_select %p1391_p3, 1, 0 }
  0x13   : > { %p1404_p6 = por %p1391_p3, %p123_p2  ;;  %p147_p7 = scmp.eq.s32.totalorder %s812_s26, 3 }
  0x14   : > { %p152_p8 = scmp.ne.s32.totalorder %s1256_s16, %s1252_s15  ;;  %p153_p9 = scmp.eq.s32.totalorder %s813_s27, 3 }
  0x15   : > { %s1701_s6 = scalar_select %p1404_p6, 1, 0 }
  0x16   : > { %p1410_p10 = por %p147_p7, %p146_p5  ;;  %p814_p11 = scmp.ge.s32.totalorder %s1292_s25, 1 }
  0x17   : > { %p1415_p12 = por %p153_p9, %p152_p8  ;;  %p160_p13 = scmp.lt.s32.totalorder %s1292_s25, 5 }
  0x18   : > { %s1702_s7 = scalar_select %p1410_p10, 1, 0 }
  0x19   : > { %s1703_s8 = scalar_select %p1415_p12, 1, 0 }
  0x1a   : > { %p1420_p0 = pnand %p814_p11, %p160_p13  ;;  %s1294_s10 = smov [#allocation3]  }
  0x1b   : > { %1704 = sst [smem:[#allocation14_spill]] %s1703_s8  ;;  %s175_s11 = sshll.u32 %s1294_s10, 4  ;;  %s176_s11 = int_to_ptr.vmem [resolvable:$true] %s175_s11 }
  0x1c   : > { %s1705_s9 = scalar_select %p1420_p0, 1, 0 }
  0x1d   : > { %p922_p1 = pneg %p1420_p0  ;;  %p935_p2 = scmp.lt.s32.totalorder %s1292_s25, 4 }
  0x1e   : > { %s1708_s2 = sld [smem:[#allocation17_spill]] }
  0x1f   : > { %p1429_p5 = pnand %p922_p1, %p1391_p3  ;;  %p1435_p7 = pnand %p935_p2, %p1396_p4 }
  0x21   : > { %s1707_s13 = scalar_select %p1435_p7, 1, 0 }
  0x22   : > { %p1110_p9 = pneg %p1429_p5 }
  0x24   : > { %s1108_s26 = scalar_lea.hbm %s1708_s2, 1024 }
  0x25   : > { %p1109_p8 = scmp.ne.s32.totalorder %s1708_s2, %s1108_s26  ;;  %p1115_p1 = scmp.lt.u32.totalorder %s1108_s26, %s1708_s2 }
  0x27   : > { %p1111_p11 = pnand %p1110_p9, %p1109_p8 }
  0x29   : > { %p1112_p13 = pneg %p1111_p11 }
  0x2b   : > { %p1117_p4 = pnand %p1115_p1, %p1112_p13 }
  0x2d   : > { %1120 = shalt.err (!%p1117_p4)
}
  0x2e   : > { %s1121_s5 = scalar_lea.vmem %s176_s11, 1024  ;;  %p1129_p6 = scmp.lt.s32.totalorder %s176_s11, %s176_s11 }
  0x2f   : > { %p1122_p2 = scmp.ne.s32.totalorder %s176_s11, %s1121_s5  ;;  %p1130_p3 = scmp.lt.s32.totalorder %s1121_s5, %s1121_s5 }
  0x31   : > { %p1124_p12 = pnand %p1122_p2, %p1110_p9  ;;  %p1131_p0 = por %p1130_p3, %p1129_p6 }
  0x33   : > { %p1125_p10 = pneg %p1124_p12 }
  0x35   : > { %p1132_p7 = pnand %p1131_p0, %p1125_p10 }
  0x37   : > { %1135 = shalt.err (!%p1132_p7)
}
  0x38   : > { %s1689_s14 = smov 256   ;;  %s1296_s28 = smov 16  }
  0x39   : > { %925 = dma.hbm_to_vmem [thread:$0]  (!%p1429_p5), %s1708_s2, 1024, %s176_s11, [#allocation4], %s1689_s14, %s1689_s14, %s1296_s28  }
  0x3a   : > { %s30_s26 = sadd.s32 1, %s1284_s23  ;;  %s33_s27 = sadd.s32 1, %s1288_s24 }
  0x3b   : > { %p31_p3 = scmp.ge.s32.totalorder %s30_s26, 2  ;;  %s197_s10 = sand.u32 1, %s1272_s20  }
  0x3c   : > { %s817_s5 = sshll.u32 %s197_s10, 8  ;;  %s819_s12 = sshll.u32 %s1288_s24, 1 }
  0x3d   : > { %s1737_s26 = smov (%p31_p3, %s30_s26), 0  ;;  %s1739_s27 = smov (!%p31_p3, %s33_s27), %s1288_s24 }
  0x3e   : > { %1709 = sst [smem:[#allocation15_spill]] %s1737_s26  ;;  %s105_s8 = ssub.s32 %s1284_s23, %s1737_s26 }
  0x3f   : > { %p35_p6 = scmp.ge.s32.totalorder %s1739_s27, 2  ;;  %s876_s15 = sshll.u32 %s1284_s23, 7 }
  0x40   : > { %s201_s30 = scalar_lea.vmem [#allocation6], %s817_s5  ;;  %s208_s28 = sadd.s32 %s876_s15, %s819_s12 }
  0x41   : > { %s211_s11 = sshll.u32 %s201_s30, 4  ;;  %s1741_s27 = smov (%p35_p6, %s1739_s27), 0  ;;  %s1469_s11 = int_to_ptr.vmem [resolvable:$true] %s211_s11 }
  0x42   : > { %1710 = sst [smem:[#allocation16_spill]] %s1741_s27  ;;  %s106_s18 = ssub.s32 %s1288_s24, %s1741_s27 }
  0x43   : > { %s821_s14 = sshll.u32 %s208_s28, 6  ;;  %s107_s2 = sor.u32 %s106_s18, %s105_s8 }
  0x44   : > { %p134_p10 = scmp.eq.s32.totalorder %s106_s18, 0  ;;  %p108_p12 = scmp.eq.s32.totalorder %s107_s2, 0 }
  0x45   : > { %s1476_s4 = scalar_lea.hbm %s1679_s3, %s821_s14  ;;  %s1711_s5 = sadd.s32 1, %s1260_s17 }
  0x46   : > { %s1481_s30 = scalar_select %p134_p10, %s1260_s17, %s1711_s5  }
  0x47   : > { %s1712_s15 = sadd.s32 1, %s1272_s20  ;;  %s1488_s27 = scalar_lea.sflag [#allocation7], %s197_s10 }
  0x48   : > { %s1486_s12 = scalar_select %p108_p12, %s1272_s20, %s1712_s15  }
  0x49   : > { %s1136_s8 = scalar_lea.hbm %s1476_s4, 4096  ;;  %p1713_p5 = scmp.ne.s32.totalorder %s1707_s13, 0 }
  0x4a   : > { %p1137_p0 = scmp.ne.s32.totalorder %s1476_s4, %s1136_s8  ;;  %s1141_s14 = scalar_lea.hbm %s1679_s3, 16384 }
  0x4b   : > { %p1138_p7 = pneg %p1713_p5  ;;  %p1142_p11 = scmp.lt.u32.totalorder %s1476_s4, %s1679_s3 }
  0x4c   : > { %p1143_p13 = scmp.lt.u32.totalorder %s1141_s14, %s1136_s8  ;;  %p1145_p4 = scmp.lt.u32.totalorder %s1136_s8, %s1476_s4 }
  0x4d   : > { %p1139_p8 = pnand %p1138_p7, %p1137_p0 }
  0x4e   : > { %p1144_p1 = por %p1143_p13, %p1142_p11 }
  0x4f   : > { %p1140_p9 = pneg %p1139_p8 }
  0x50   : > { %p1146_p2 = por %p1145_p4, %p1144_p1 }
  0x52   : > { %p1147_p3 = pnand %p1146_p2, %p1140_p9 }
  0x54   : > { %1150 = shalt.err (!%p1147_p3)
}
  0x55   : > { %s1151_s10 = scalar_lea.vmem %s1469_s11, 4096  ;;  %s1297_s18 = smov [#allocation6]  }
  0x56   : > { %p1152_p6 = scmp.ne.s32.totalorder %s1469_s11, %s1151_s10  ;;  %s1156_s5 = sshll.u32 %s1297_s18, 4  ;;  %s1157_s5 = int_to_ptr.vmem [resolvable:$false] %s1156_s5 }
  0x57   : > { %s1158_s15 = scalar_lea.vmem %s1157_s5, 8192  ;;  %p1159_p0 = scmp.lt.s32.totalorder %s1469_s11, %s1157_s5 }
  0x58   : > { %p1154_p10 = pnand %p1152_p6, %p1138_p7  ;;  %p1160_p8 = scmp.lt.s32.totalorder %s1158_s15, %s1151_s10 }
  0x5a   : > { %p1155_p12 = pneg %p1154_p10  ;;  %p1161_p11 = por %p1160_p8, %p1159_p0 }
  0x5c   : > { %p1162_p13 = pnand %p1161_p11, %p1155_p12 }
  0x5e   : > { %1165 = shalt.err (!%p1162_p13)
}
  0x5f   : > { %s1298_s8 = smov 128   ;;  %s1299_s2 = smov 8  }
  0x60   : > { %s1714_s25 = smov 256   ;;  %p1715_p7 = scmp.ne.s32.totalorder %s1705_s9, 0 }
  0x61   : > { %929 = dma.hbm_to_vmem [thread:$0]  (!%p1713_p5), %s1476_s4, 4096, %s1469_s11, %s1488_s27, %s1714_s25, %s1298_s8, %s1299_s2  }
  0x62   : > { %223 = sbr.rel (%p1715_p7) target bundleno = 445 (0x1bd), region = 36  ;;  %p1716_p9 = scmp.ne.s32.totalorder (!%p1715_p7), %s1699_s29, 0 }
  0x69   : > { %1239 = dma.done.wait (%p1716_p9), [#allocation4], 1024  }
  0x6a   : > { %1241 = vsyncadd (%p1716_p9), [#allocation4], 4294966272  ;;  %s229_s14 = sand.u32 1, %s1268_s19   ;;  %p1717_p1 = scmp.ne.s32.totalorder %s1701_s6, 0 }
  0x6b   : > { %s824_s26 = sshll.u32 %s229_s14, 8  ;;  %s230_s28 = scalar_lea.sflag [#allocation7], %s229_s14 }
  0x6c   : > { %s1524_s10 = scalar_lea.vmem [#allocation6], %s824_s26 }
  0x6d   : > { %1243 = dma.done.wait (%p1717_p1), %s230_s28, 4096  }
  0x6e   : > { %1245 = vsyncadd (%p1717_p1), %s230_s28, 4294963200  ;;  %s259_s4 = sand.u32 1, %s1256_s16   ;;  %s826_s9 = sshll.u32 %s1280_s22, 1 }
  0x6f   : > { %s825_s29 = sshll.u32 %s259_s4, 5  ;;  %p263_p5 = scmp.lt.s32.totalorder %s826_s9, 3 }
  0x70   : > { %s1540_s18 = scalar_lea.vmem [#allocation8], %s825_s29  ;;  %p827_p4 = scmp.ne.s32.totalorder %s1276_s21, 0 }
  0x71   : > { %s1743_s9 = smov (!%p263_p5, %s826_s9), 3  ;;  %v1300_v0 = vmov (!%p827_p4), 0.0  }
  0x72   : > { %s265_s11 = scalar_lea.vmem %s1677_s1, %s1743_s9  ;;  %273 = sbr.rel (%p827_p4) target bundleno = 121 (0x79), region = 48  ;;  %274 = vst [vmem:[#allocation2] sm:$0xff] (!%p827_p4), %v1300_v0  ;;  %275 = vst [vmem:[#allocation2 + $0x8] sm:$0xff] (!%p827_p4), %v1300_v0 }
  0x73   : > { %276 = vst [vmem:[#allocation2 + $0x10] sm:$0xff] (!%p827_p4), %v1300_v0  ;;  %277 = vst [vmem:[#allocation2 + $0x18] sm:$0xff] (!%p827_p4), %v1300_v0 }
  0x74   : > { %278 = vst [vmem:[#allocation2 + $0x20] sm:$0xff] (!%p827_p4), %v1300_v0  ;;  %279 = vst [vmem:[#allocation2 + $0x28] sm:$0xff] (!%p827_p4), %v1300_v0 }
  0x75   : > { %280 = vst [vmem:[#allocation2 + $0x30] sm:$0xff] (!%p827_p4), %v1300_v0  ;;  %281 = vst [vmem:[#allocation2 + $0x38] sm:$0xff] (!%p827_p4), %v1300_v0 }
  0x79 PF: > { %v1036_v1 = vld [vmem:[%s1524_s10 + $0x4] ss:$8 sps:$4 sm:$0xff]   ;;  %v1038_v2 = vld [vmem:[%s1524_s10] ss:$8 sps:$4 sm:$0xff]   ;;  %v1039_v3 = vld [vmem:[%s1524_s10 + $0x14] ss:$8 sps:$4 sm:$0xff]  }
  0x7a   : > { %511 = vmatprep.subr.bf16.mxu0 %v1036_v1  ;;  %882 = vmatprep.subr.bf16.mxu1 %v1036_v1  ;;  %v1041_v4 = vld [vmem:[%s1524_s10 + $0x10] ss:$8 sps:$4 sm:$0xff]   ;;  %v1042_v5 = vld [vmem:[%s1524_s10 + $0x24] ss:$8 sps:$4 sm:$0xff]   ;;  %v1044_v6 = vld [vmem:[%s1524_s10 + $0x20] ss:$8 sps:$4 sm:$0xff]  }
  0x7b   : > { %512 = vmatpush1.bf16.msra.mxu0 %v1038_v2  ;;  %898 = vmatpush1.bf16.msra.mxu1 %v1038_v2  ;;  %v1045_v7 = vld [vmem:[%s1524_s10 + $0x34] ss:$8 sps:$4 sm:$0xff]   ;;  %s828_s6 = sshll.u32 %s1276_s21, 8  ;;  %v1047_v8 = vld [vmem:[%s1524_s10 + $0x30] ss:$8 sps:$4 sm:$0xff]   ;;  %v291_v37 = vld [vmem:[#allocation2] sm:$0xff] }
  0x7c   : > { %513 = vmatprep.subr.bf16.mxu0 %v1039_v3  ;;  %883 = vmatprep.subr.bf16.mxu1 %v1039_v3  ;;  %v1048_v9 = vld [vmem:[%s1524_s10 + $0x44] ss:$8 sps:$4 sm:$0xff]   ;;  %s283_s5 = sshra.s32 %s828_s6, 7  ;;  %v1050_v10 = vld [vmem:[%s1524_s10 + $0x40] ss:$8 sps:$4 sm:$0xff]   ;;  %v293_v43 = vld [vmem:[#allocation2 + $0x10] sm:$0xff] }
  0x7d   : > { %v1051_v11 = vld [vmem:[%s1524_s10 + $0x54] ss:$8 sps:$4 sm:$0xff]   ;;  %s829_s15 = sshll.u32 %s283_s5, 2  ;;  %v1053_v12 = vld [vmem:[%s1524_s10 + $0x50] ss:$8 sps:$4 sm:$0xff]   ;;  %v295_v38 = vld [vmem:[#allocation2 + $0x20] sm:$0xff] }
  0x7e   : > { %v1054_v13 = vld [vmem:[%s1524_s10 + $0x64] ss:$8 sps:$4 sm:$0xff]   ;;  %s1557_s8 = scalar_lea.vmem [#allocation3], %s829_s15  ;;  %v1056_v15 = vld [vmem:[%s1524_s10 + $0x60] ss:$8 sps:$4 sm:$0xff]   ;;  %v297_v44 = vld [vmem:[#allocation2 + $0x30] sm:$0xff] }
  0x7f   : > { %514 = vmatpush1.bf16.msra.mxu0 %v1041_v4  ;;  %899 = vmatpush1.bf16.msra.mxu1 %v1041_v4  ;;  %v1086_v14 = vld [vmem:[%s1557_s8 + $0x4] ss:$16 sps:$4 sm:$0xff]   ;;  %v1059_v18 = vld [vmem:[%s1524_s10 + $0x70] ss:$8 sps:$4 sm:$0xff]   ;;  %v1062_v20 = vld [vmem:[%s1524_s10 + $0x80] ss:$8 sps:$4 sm:$0xff]  }
  0x80   : > { %515 = vmatprep.subr.bf16.mxu0 %v1042_v5  ;;  %884 = vmatprep.subr.bf16.mxu1 %v1042_v5  ;;  %v1089_v16 = vld [vmem:[%s1557_s8 + $0x24] ss:$16 sps:$4 sm:$0xff]   ;;  %v1065_v22 = vld [vmem:[%s1524_s10 + $0x90] ss:$8 sps:$4 sm:$0xff]   ;;  %v1068_v24 = vld [vmem:[%s1524_s10 + $0xa0] ss:$8 sps:$4 sm:$0xff]  }
  0x81   : > { %v1057_v17 = vld [vmem:[%s1524_s10 + $0x74] ss:$8 sps:$4 sm:$0xff]   ;;  %543 = vmatprep.mubr.bf16.mxu0 %v1086_v14  ;;  %553 = vmatprep.mubr.bf16.mxu1 %v1089_v16  ;;  %v1060_v19 = vld [vmem:[%s1524_s10 + $0x84] ss:$8 sps:$4 sm:$0xff]   ;;  %v1071_v26 = vld [vmem:[%s1524_s10 + $0xb0] ss:$8 sps:$4 sm:$0xff]  }
  0x82   : > { %v1063_v21 = vld [vmem:[%s1524_s10 + $0x94] ss:$8 sps:$4 sm:$0xff]   ;;  %v1066_v23 = vld [vmem:[%s1524_s10 + $0xa4] ss:$8 sps:$4 sm:$0xff]   ;;  %v1074_v28 = vld [vmem:[%s1524_s10 + $0xc0] ss:$8 sps:$4 sm:$0xff]  }
  0x83   : > { %516 = vmatpush1.bf16.msra.mxu0 %v1044_v6  ;;  %900 = vmatpush1.bf16.msra.mxu1 %v1044_v6  ;;  %v1069_v25 = vld [vmem:[%s1524_s10 + $0xb4] ss:$8 sps:$4 sm:$0xff]   ;;  %v1072_v27 = vld [vmem:[%s1524_s10 + $0xc4] ss:$8 sps:$4 sm:$0xff]   ;;  %v1077_v30 = vld [vmem:[%s1524_s10 + $0xd0] ss:$8 sps:$4 sm:$0xff]  }
  0x84   : > { %517 = vmatprep.subr.bf16.mxu0 %v1045_v7  ;;  %885 = vmatprep.subr.bf16.mxu1 %v1045_v7  ;;  %v1075_v29 = vld [vmem:[%s1524_s10 + $0xd4] ss:$8 sps:$4 sm:$0xff]   ;;  %v1078_v31 = vld [vmem:[%s1524_s10 + $0xe4] ss:$8 sps:$4 sm:$0xff]   ;;  %v1080_v32 = vld [vmem:[%s1524_s10 + $0xe0] ss:$8 sps:$4 sm:$0xff]  }
  0x85   : > { %v1081_v33 = vld [vmem:[%s1524_s10 + $0xf4] ss:$8 sps:$4 sm:$0xff]   ;;  %v1083_v34 = vld [vmem:[%s1524_s10 + $0xf0] ss:$8 sps:$4 sm:$0xff]   ;;  %v292_v39 = vld [vmem:[#allocation2 + $0x8] sm:$0xff]  ;;  %p866_p2 = scmp.ne.s32.totalorder %s1276_s21, 1 }
  0x86   : > { %v1084_v35 = vld [vmem:[%s1557_s8] ss:$16 sps:$4 sm:$0xff]   ;;  %v1301_v63 = vmov (!%p866_p2), 0   ;;  %v587_v0 = vld [vmem:[%s1676_s0 + $0x18] sm:$0xff] (!%p866_p2)  ;;  %v585_v1 = vld [vmem:[%s1676_s0 + $0x8] sm:$0xff] (!%p866_p2)  ;;  %v610_v2 = vlaneseq (!%p866_p2) }
  0x87   : > { %518 = vmatpush1.bf16.msra.mxu0 %v1047_v8  ;;  %901 = vmatpush1.bf16.msra.mxu1 %v1047_v8  ;;  %v1087_v36 = vld [vmem:[%s1557_s8 + $0x20] ss:$16 sps:$4 sm:$0xff]  }
  0x88   : > { %519 = vmatprep.subr.bf16.mxu0 %v1048_v9  ;;  %886 = vmatprep.subr.bf16.mxu1 %v1048_v9  ;;  %v296_v40 = vld [vmem:[#allocation2 + $0x28] sm:$0xff]  ;;  %v294_v49 = vld [vmem:[#allocation2 + $0x18] sm:$0xff]  ;;  %v611_v3 = vshrl.u32 (!%p866_p2), %v610_v2, 7 }
  0x89   : > { %v298_v50 = vld [vmem:[#allocation2 + $0x38] sm:$0xff]  ;;  %v586_v61 = vld [vmem:[%s1676_s0 + $0x10] sm:$0xff] (!%p866_p2)  ;;  %1091 = vset.pattern.permute.xlu1 (!%p866_p2), %v1301_v63  ;;  %1090 = vset.pattern.permute.xlu0 (!%p866_p2), %v1301_v63 }
  0x8a   : > { %v584_v62 = vld [vmem:[%s1676_s0] sm:$0xff] (!%p866_p2)  ;;  %601 = vperm.xlu1 (!%p866_p2), %1091, %v586_v61   ;;  %v612_v4 = vsub.s32 (!%p866_p2), 0, %v611_v3  ;;  %v616_v5 = vsub.s32 (!%p866_p2), 1, %v611_v3 }
  0x8b   : > { %520 = vmatpush1.bf16.msra.mxu0 %v1050_v10  ;;  %902 = vmatpush1.bf16.msra.mxu1 %v1050_v10  ;;  %v588_v6 = vld [vmem:[%s265_s11] sm:$0x3] (!%p866_p2) }
  0x8c   : > { %521 = vmatprep.subr.bf16.mxu0 %v1051_v11  ;;  %887 = vmatprep.subr.bf16.mxu1 %v1051_v11  ;;  %v613_v7 = vrot.slane (!%p866_p2), %v588_v6, %v612_v4  ;;  %v617_v8 = vrot.slane (!%p866_p2), %v588_v6, %v616_v5 }
  0x8d   : > { %591 = vperm.xlu0 (!%p866_p2), %1090, %v584_v62  }
  0x8e   : > { %606 = vperm.xlu1 (!%p866_p2), %1091, %v587_v0  }
  0x8f   : > { %522 = vmatpush1.bf16.msra.mxu0 %v1053_v12  ;;  %903 = vmatpush1.bf16.msra.mxu1 %v1053_v12 }
  0x90   : > { %523 = vmatprep.subr.bf16.mxu0 %v1054_v13  ;;  %888 = vmatprep.subr.bf16.mxu1 %v1054_v13 }
  0x91   : > { %596 = vperm.xlu0 (!%p866_p2), %1090, %v585_v1  }
  0x93   : > { %524 = vmatpush1.bf16.msra.mxu0 %v1056_v15  ;;  %904 = vmatpush1.bf16.msra.mxu1 %v1056_v15 }
  0x94   : > { %525 = vmatprep.subr.bf16.mxu0 %v1057_v17  ;;  %889 = vmatprep.subr.bf16.mxu1 %v1057_v17 }
  0x97   : > { %526 = vmatpush1.bf16.msra.mxu0 %v1059_v18  ;;  %905 = vmatpush1.bf16.msra.mxu1 %v1059_v18 }
  0x98   : > { %527 = vmatprep.subr.bf16.mxu0 %v1060_v19  ;;  %890 = vmatprep.subr.bf16.mxu1 %v1060_v19 }
  0x9b   : > { %528 = vmatpush1.bf16.msra.mxu0 %v1062_v20  ;;  %906 = vmatpush1.bf16.msra.mxu1 %v1062_v20 }
  0x9c   : > { %529 = vmatprep.subr.bf16.mxu0 %v1063_v21  ;;  %891 = vmatprep.subr.bf16.mxu1 %v1063_v21 }
  0x9f   : > { %530 = vmatpush1.bf16.msra.mxu0 %v1065_v22  ;;  %907 = vmatpush1.bf16.msra.mxu1 %v1065_v22 }
  0xa0   : > { %531 = vmatprep.subr.bf16.mxu0 %v1066_v23  ;;  %892 = vmatprep.subr.bf16.mxu1 %v1066_v23 }
  0xa3   : > { %532 = vmatpush1.bf16.msra.mxu0 %v1068_v24  ;;  %908 = vmatpush1.bf16.msra.mxu1 %v1068_v24 }
  0xa4   : > { %533 = vmatprep.subr.bf16.mxu0 %v1069_v25  ;;  %893 = vmatprep.subr.bf16.mxu1 %v1069_v25 }
  0xa7   : > { %534 = vmatpush1.bf16.msra.mxu0 %v1071_v26  ;;  %909 = vmatpush1.bf16.msra.mxu1 %v1071_v26 }
  0xa8   : > { %535 = vmatprep.subr.bf16.mxu0 %v1072_v27  ;;  %894 = vmatprep.subr.bf16.mxu1 %v1072_v27 }
  0xab   : > { %536 = vmatpush1.bf16.msra.mxu0 %v1074_v28  ;;  %910 = vmatpush1.bf16.msra.mxu1 %v1074_v28 }
  0xac   : > { %537 = vmatprep.subr.bf16.mxu0 %v1075_v29  ;;  %895 = vmatprep.subr.bf16.mxu1 %v1075_v29 }
  0xaf   : > { %538 = vmatpush1.bf16.msra.mxu0 %v1077_v30  ;;  %911 = vmatpush1.bf16.msra.mxu1 %v1077_v30 }
  0xb0   : > { %539 = vmatprep.subr.bf16.mxu0 %v1078_v31  ;;  %896 = vmatprep.subr.bf16.mxu1 %v1078_v31 }
  0xb3   : > { %540 = vmatpush1.bf16.msra.mxu0 %v1080_v32  ;;  %912 = vmatpush1.bf16.msra.mxu1 %v1080_v32 }
  0xb4   : > { %541 = vmatprep.subr.bf16.mxu0 %v1081_v33  ;;  %897 = vmatprep.subr.bf16.mxu1 %v1081_v33 }
  0xb7   : > { %542 = vmatpush1.bf16.msra.mxu0 %v1083_v34  ;;  %913 = vmatpush1.bf16.msra.mxu1 %v1083_v34 }
  0xba   : > { %544 = vmatmul.mubr.bf16.vlgmr.msra.gmra.mrb[0].mxu0 %v1084_v35  ;;  %554 = vmatmul.mubr.bf16.vlgmr.msra.gmra.mrb[0].mxu1 %v1087_v36 }
 0x109   : > { %v602_v9 = vpop.permute.xlu1 (!%p866_p2), %601 }
 0x10a   : > { %v624_v11 = vmul.f32 (!%p866_p2), %v613_v7, %v602_v9  ;;  %v625_v12 = vmul.f32 (!%p866_p2), %v617_v8, %v602_v9 }
 0x10c   : > { %v592_v10 = vpop.permute.xlu0 (!%p866_p2), %591  ;;  %v632_v15 = vsub.f32 (!%p866_p2), 1.0, %v624_v11  ;;  %v633_v16 = vsub.f32 (!%p866_p2), 1.0, %v625_v12 }
 0x10d   : > { %v620_v13 = vmul.f32 (!%p866_p2), %v613_v7, %v592_v10  ;;  %v621_v14 = vmul.f32 (!%p866_p2), %v617_v8, %v592_v10  ;;  %v607_v19 = vpop.permute.xlu1 (!%p866_p2), %606 }
 0x10e   : > { %1092 = vrcp.f32 (!%p866_p2), %v632_v15  ;;  %v626_v21 = vmul.f32 (!%p866_p2), %v613_v7, %v607_v19  ;;  %v627_v22 = vmul.f32 (!%p866_p2), %v617_v8, %v607_v19 }
 0x10f   : > { %v628_v17 = vsub.f32 (!%p866_p2), 1.0, %v620_v13  ;;  %v629_v18 = vsub.f32 (!%p866_p2), 1.0, %v621_v14  ;;  %1094 = vrcp.f32 (!%p866_p2), %v633_v16 }
 0x110   : > { %v597_v20 = vpop.permute.xlu0 (!%p866_p2), %596  ;;  %v634_v25 = vsub.f32 (!%p866_p2), 1.0, %v626_v21  ;;  %v635_v26 = vsub.f32 (!%p866_p2), 1.0, %v627_v22 }
 0x111   : > { %v622_v23 = vmul.f32 (!%p866_p2), %v613_v7, %v597_v20  ;;  %v623_v24 = vmul.f32 (!%p866_p2), %v617_v8, %v597_v20  ;;  %1096 = vrcp.f32 (!%p866_p2), %v628_v17 }
 0x112   : > { %1098 = vrcp.f32 (!%p866_p2), %v629_v18 }
 0x113   : > { %v630_v27 = vsub.f32 (!%p866_p2), 1.0, %v622_v23  ;;  %v631_v28 = vsub.f32 (!%p866_p2), 1.0, %v623_v24  ;;  %1100 = vrcp.f32 (!%p866_p2), %v634_v25 }
 0x114   : > { %1102 = vrcp.f32 (!%p866_p2), %v635_v26 }
 0x115   : > { %1104 = vrcp.f32 (!%p866_p2), %v630_v27 }
 0x116   : > { %1106 = vrcp.f32 (!%p866_p2), %v631_v28 }
 0x118   : > { %v1093_v31 = vpop.eup (!%p866_p2), %1092 }
 0x119   : > { %v1095_v33 = vpop.eup (!%p866_p2), %1094 }
 0x11b   : > { %v1097_v36 = vpop.eup (!%p866_p2), %1096 }
 0x18d   : > { %v545_v41 = vpop.f32.mrb[0].mxu0  ;;  %v555_v42 = vpop.f32.mrb[0].mxu1  ;;  %583 = sbr.rel (%p866_p2) target bundleno = 417 (0x1a1), region = 52 }
 0x18e   : > { %v564_v45 = vadd.f32 %v545_v41, %v291_v37  ;;  %v568_v46 = vadd.f32 %v555_v42, %v295_v38  ;;  %v547_v47 = vpop.f32.mrb[1].mxu0  ;;  %v557_v48 = vpop.f32.mrb[1].mxu1 }
 0x18f   : > { %v565_v51 = vadd.f32 %v547_v47, %v292_v39  ;;  %v569_v52 = vadd.f32 %v557_v48, %v296_v40  ;;  %v549_v53 = vpop.f32.mrb[2].mxu0  ;;  %v559_v54 = vpop.f32.mrb[2].mxu1 }
 0x190   : > { %572 = vst [vmem:[#allocation2] sm:$0xff] %v564_v45  ;;  %576 = vst [vmem:[#allocation2 + $0x20] sm:$0xff] %v568_v46  ;;  %v566_v55 = vadd.f32 %v549_v53, %v293_v43  ;;  %v570_v56 = vadd.f32 %v559_v54, %v297_v44  ;;  %v551_v57 = vpop.f32.mrb[3].mxu0  ;;  %v561_v58 = vpop.f32.mrb[3].mxu1 }
 0x191   : > { %573 = vst [vmem:[#allocation2 + $0x8] sm:$0xff] %v565_v51  ;;  %577 = vst [vmem:[#allocation2 + $0x28] sm:$0xff] %v569_v52  ;;  %v567_v59 = vadd.f32 %v551_v57, %v294_v49  ;;  %v571_v60 = vadd.f32 %v561_v58, %v298_v50  ;;  %v1099_v39 = vpop.eup (!%p866_p2), %1098 }
 0x192   : > { %574 = vst [vmem:[#allocation2 + $0x10] sm:$0xff] %v566_v55  ;;  %578 = vst [vmem:[#allocation2 + $0x30] sm:$0xff] %v570_v56  ;;  %v1101_v42 = vpop.eup (!%p866_p2), %1100 }
 0x193   : > { %575 = vst [vmem:[#allocation2 + $0x18] sm:$0xff] %v567_v59  ;;  %579 = vst [vmem:[#allocation2 + $0x38] sm:$0xff] %v571_v60  ;;  %v1103_v46 = vpop.eup (!%p866_p2), %1102 }
 0x194   : > { %v1105_v49 = vpop.eup %1104 }
 0x195   : > { %v1107_v52 = vpop.eup %1106 }
 0x197   : > { %v640_v29 = vld [vmem:[#allocation2 + $0x20] sm:$0xff] }
 0x198   : > { %v641_v30 = vld [vmem:[#allocation2 + $0x28] sm:$0xff]  ;;  %v636_v32 = vld [vmem:[#allocation2] sm:$0xff]  ;;  %v656_v34 = vmul.f32 %v1093_v31, %v640_v29 }
 0x199   : > { %v637_v35 = vld [vmem:[#allocation2 + $0x8] sm:$0xff]  ;;  %v657_v37 = vmul.f32 %v1095_v33, %v641_v30  ;;  %v642_v38 = vld [vmem:[#allocation2 + $0x30] sm:$0xff]  ;;  %v652_v40 = vmul.f32 %v1097_v36, %v636_v32 }
 0x19a   : > { %v643_v41 = vld [vmem:[#allocation2 + $0x38] sm:$0xff]  ;;  %v653_v44 = vmul.f32 %v1099_v39, %v637_v35  ;;  %v638_v45 = vld [vmem:[#allocation2 + $0x10] sm:$0xff]  ;;  %v658_v47 = vmul.f32 %v1101_v42, %v642_v38 }
 0x19b   : > { %v879_v43 = vpack.c.bf16 %v657_v37, %v656_v34  ;;  %v639_v48 = vld [vmem:[#allocation2 + $0x18] sm:$0xff]  ;;  %v659_v51 = vmul.f32 %v1103_v46, %v643_v41  ;;  %v654_v53 = vmul.f32 %v1105_v49, %v638_v45 }
 0x19c   : > { %v877_v50 = vpack.c.bf16 %v653_v44, %v652_v40  ;;  %v655_v55 = vmul.f32 %v1107_v52, %v639_v48 }
 0x19d   : > { %686 = vst [vmem:[%s1540_s18 + $0x10] sm:$0xff] %v879_v43  ;;  %v880_v54 = vpack.c.bf16 %v659_v51, %v658_v47 }
 0x19e   : > { %684 = vst [vmem:[%s1540_s18] sm:$0xff] %v877_v50  ;;  %v878_v56 = vpack.c.bf16 %v655_v55, %v654_v53 }
 0x19f   : > { %687 = vst [vmem:[%s1540_s18 + $0x18] sm:$0xff] %v880_v54 }
 0x1a0   : > { %685 = vst [vmem:[%s1540_s18 + $0x8] sm:$0xff] %v878_v56 }
 0x1a1 PF: > { %s881_s9 = sshll.u32 %s1280_s22, 7  ;;  %s1718_s5 = sld [smem:[#allocation18_spill]] }
 0x1a2   : > { %s702_s8 = sshll.u32 %s1540_s18, 4  ;;  %s1615_s2 = scalar_lea.sflag [#allocation5], %s259_s4  ;;  %s1611_s8 = int_to_ptr.vmem [resolvable:$true] %s702_s8 }
 0x1a3   : > { %s1166_s25 = scalar_lea.vmem %s1611_s8, 512  ;;  %p1719_p6 = scmp.ne.s32.totalorder %s1702_s7, 0 }
 0x1a4   : > { %p1167_p3 = scmp.ne.s32.totalorder %s1611_s8, %s1166_s25  ;;  %s1302_s22 = smov [#allocation8]  }
 0x1a5   : > { %s1170_s14 = sshll.u32 %s1302_s22, 4  ;;  %s1171_s14 = int_to_ptr.vmem [resolvable:$false] %s1170_s14 }
 0x1a6   : > { %p1168_p10 = pnand %p1167_p3, %p1719_p6  ;;  %s1172_s26 = scalar_lea.vmem %s1171_s14, 1024 }
 0x1a7   : > { %s1608_s15 = scalar_lea.hbm %s1718_s5, %s881_s9  ;;  %p1173_p0 = scmp.lt.s32.totalorder %s1611_s8, %s1171_s14 }
 0x1a8   : > { %p1169_p12 = pneg %p1168_p10  ;;  %p1174_p8 = scmp.lt.s32.totalorder %s1172_s26, %s1166_s25 }
 0x1aa   : > { %p1175_p11 = por %p1174_p8, %p1173_p0 }
 0x1ac   : > { %p1176_p13 = pnand %p1175_p11, %p1169_p12 }
 0x1ae   : > { %1179 = shalt.err (!%p1176_p13)
}
 0x1af   : > { %s1180_s4 = scalar_lea.hbm %s1608_s15, 512  ;;  %s1184_s10 = scalar_lea.hbm %s1718_s5, 1024 }
 0x1b0   : > { %p1181_p7 = scmp.ne.s32.totalorder %s1608_s15, %s1180_s4  ;;  %p1185_p5 = scmp.lt.u32.totalorder %s1608_s15, %s1718_s5 }
 0x1b1   : > { %p1186_p4 = scmp.lt.u32.totalorder %s1184_s10, %s1180_s4  ;;  %p1188_p3 = scmp.lt.u32.totalorder %s1180_s4, %s1608_s15 }
 0x1b2   : > { %p1182_p9 = pnand %p1181_p7, %p1719_p6 }
 0x1b3   : > { %p1187_p2 = por %p1186_p4, %p1185_p5 }
 0x1b4   : > { %p1183_p1 = pneg %p1182_p9 }
 0x1b5   : > { %p1189_p10 = por %p1188_p3, %p1187_p2 }
 0x1b7   : > { %p1190_p12 = pnand %p1189_p10, %p1183_p1 }
 0x1b9   : > { %1193 = shalt.err (!%p1190_p12)
}
 0x1ba   : > { %s1303_s13 = smov 128   ;;  %s1304_s27 = smov 256  }
 0x1bb   : > { %s1305_s9 = smov 8  }
 0x1bc   : > { %920 = dma.vmem_to_hbm [thread:$0]  (%p1719_p6), %s1611_s8, 512, %s1608_s15, %s1615_s2, %s1303_s13, %s1304_s27, %s1305_s9  }
 0x1bd PF: > { %s1720_s11 = sld [smem:[#allocation13_spill]]  ;;  %s1721_s6 = sld [smem:[#allocation12_spill]] }
 0x1be   : > { %s1722_s25 = sld [smem:[#allocation14_spill]] }
 0x1c3   : > { %p937_p0 = scmp.ge.s32.totalorder %s1720_s11, 2  ;;  %s717_s22 = sand.u32 1, %s1721_s6  }
 0x1c4   : > { %p1723_p8 = scmp.ne.s32.totalorder %s1722_s25, 0  ;;  %s718_s14 = scalar_lea.sflag [#allocation5], %s717_s22 }
 0x1c6   : > { %p931_p11 = pnand %p937_p0, %p1723_p8 }
 0x1c8   : > { %1247 = dma.done.wait (!%p931_p11), %s718_s14, 512  }
 0x1c9   : > { %1249 = vsyncadd (!%p931_p11), %s718_s14, 4294966784  ;;  %s21_s25 = sadd.s32 1, %s1720_s11   ;;  %s1724_s7 = sld [smem:[#allocation15_spill]] }
 0x1ca   : > { %p18_p13 = scmp.ge.s32.totalorder %s21_s25, 6   ;;  %s1725_s8 = sld [smem:[#allocation16_spill]] }
 0x1cb   : > { %s1726_s15 = smov %s1256_s16  ;;  %s1727_s16 = smov %s1260_s17 }
 0x1cc   : > { %s1728_s17 = smov %s1481_s30  ;;  %s1729_s18 = smov %s1268_s19 }
 0x1cd   : > { %s1730_s19 = smov %s1272_s20  ;;  %s1731_s20 = smov %s1486_s12 }
 0x1ce   : > { %s1732_s21 = smov %s1284_s23  ;;  %s1733_s22 = smov %s1288_s24 }
 0x1cf   : > { %s1734_s23 = smov %s1724_s7  ;;  %20 = sbr.rel (!%p18_p13) target bundleno = 13 (0xd), region = 98 }
 0x1d0   : > { %s1735_s24 = smov %s1725_s8 }
 0x1d6   :  { %723 = vsyncpa [#allocation4], 1 }
 0x1d7   :  { %725 = vsyncpa [#allocation4 + $0x1], 1 }
 0x1d8   :  { %726 = vsyncpa [#allocation7], 1 }
 0x1d9   :  { %728 = vsyncpa [#allocation7 + $0x1], 1 }
 0x1da   :  { %729 = vsyncpa [#allocation5], 1 }
 0x1db   :  { %731 = vsyncpa [#allocation5 + $0x1], 1 }

</bundles_post_ra>
